<compile_context>
chip_gen: v5e
topology: v5e:2x2
jax: 0.10.0
libtpu: 0.0.40
codegen_flags: <defaults>
</compile_context>

<pallas_src>
import functools

import jax
import jax.numpy as jnp
from jax.experimental import pallas as pl
from jax.experimental.pallas import tpu as pltpu

LEAKY_SLOPE = 0.01  # nn.LeakyReLU() default negative_slope


def _round_up(n, m):
    return (n + m - 1) // m * m


# ---------------------------------------------------------------------------
# Kernel: four MXU matmuls + f32 bias/LeakyReLU, weights VMEM-resident.
# ---------------------------------------------------------------------------
def mlp_kernel(x_ref, w1_ref, w2_ref, w3_ref, w4_ref, b123_ref, b4_ref, o_ref):
    # x_ref: (tB, In_p) bf16; w1: (In_p, Hp); w2/w3: (Hp, Hp); w4: (Hp, Cp) bf16
    # b123: (3, Hp) f32; b4: (1, Cp) f32; o_ref: (tB, Cp) f32
    b_hidden = b123_ref[...]                     # tiny f32 load
    h = x_ref[...]                               # bf16 MXU operand
    for layer, w_ref in enumerate((w1_ref, w2_ref, w3_ref)):
        z = jnp.dot(h, w_ref[...], preferred_element_type=jnp.float32) + b_hidden[layer]
        z = jnp.maximum(z, LEAKY_SLOPE * z)      # LeakyReLU (slope in (0,1)): mul+max
        h = z.astype(jnp.bfloat16)               # downcast only for the next MXU op
    out = jnp.dot(h, w4_ref[...], preferred_element_type=jnp.float32) + b4_ref[...]
    o_ref[...] = out


# ---------------------------------------------------------------------------
# One-time parameter packing (hoisted out of the per-call path).
# ---------------------------------------------------------------------------
def pack_params(params):
    """Zero-pad + cast each weight independently to lane-dense bf16 tiles.

    Weights stored as [in, out]: w1 -> (In_p, Hp), w2/w3 -> (Hp, Hp), w4 -> (Hp, Cp).
    Biases stay f32: b1..b3 packed into (3, Hp), b4 into (1, Cp).
    """
    input_size, hidden_size = params["w1"].shape
    num_classes = params["w4"].shape[1]
    In_p = _round_up(input_size, 128)
    Hp = _round_up(hidden_size, 128)
    Cp = _round_up(num_classes, 128)

    def pad_w(w, rows, cols):
        buf = jnp.zeros((rows, cols), jnp.bfloat16)
        return buf.at[: w.shape[0], : w.shape[1]].set(w.astype(jnp.bfloat16))

    w1 = pad_w(params["w1"], In_p, Hp)
    w2 = pad_w(params["w2"], Hp, Hp)
    w3 = pad_w(params["w3"], Hp, Hp)
    w4 = pad_w(params["w4"], Hp, Cp)

    b123 = jnp.zeros((3, Hp), jnp.float32)
    for i in (1, 2, 3):
        b = params[f"b{i}"].reshape(-1).astype(jnp.float32)
        b123 = b123.at[i - 1, : b.shape[0]].set(b)
    b4 = jnp.zeros((1, Cp), jnp.float32)
    b4 = b4.at[0, :num_classes].set(params["b4"].reshape(-1).astype(jnp.float32))

    packed = (w1, w2, w3, w4, b123, b4)
    return packed, num_classes


# ---------------------------------------------------------------------------
# Jitted forward.
# ---------------------------------------------------------------------------
@functools.partial(jax.jit, static_argnames=("num_classes", "single_buffer_weights"))
def _mlp_forward_impl(x, w1, w2, w3, w4, b123, b4, *, num_classes, single_buffer_weights):
    B, input_size = x.shape
    In_p, Hp = w1.shape
    Cp = w4.shape[1]

    # Batch tiling: 16-row granularity (bf16 packed vreg tile) for small batches,
    # 256/512-row tiles for large batches (better HBM roofline, amortized step overhead).
    if B <= 256:
        tB = _round_up(B, 16)
    elif B >= 1024 and Hp <= 2048:
        tB = 512
    else:
        tB = 256
    Bp = _round_up(B, tB)

    x_p = jnp.zeros((Bp, In_p), jnp.bfloat16)
    x_p = x_p.at[:B, :input_size].set(x.astype(jnp.bfloat16))

    # VMEM budget from the actual buffers: resident weights/biases + double-buffered
    # x/out tiles + headroom for the f32 intermediates.
    w_bytes = 2 * (w1.size + w2.size + w3.size + w4.size)
    b_bytes = 4 * (b123.size + b4.size)
    w_buf = 1 if single_buffer_weights else 2
    vmem_bytes = (w_buf * (w_bytes + b_bytes)
                  + 2 * tB * In_p * 2          # x tiles (bf16, double-buffered)
                  + 2 * tB * Cp * 4            # out tiles (f32, double-buffered)
                  + 3 * tB * Hp * 4)           # f32 intermediate headroom
    vmem_limit = int(min(max(vmem_bytes + (4 << 20), 32 << 20), 100 << 20))
    # TODO(synk): if resident weight bytes exceed ~48 MiB (v7x has 64 MiB VMEM/TC), split the
    # hidden dim over an extra "arbitrary" grid axis with an f32 accumulator instead of
    # keeping all four layers resident.

    def resident_spec(shape):
        idx_map = lambda i: (0,) * len(shape)
        if single_buffer_weights:
            # Constant index_map across the grid -> no second pipeline buffer needed.
            return pl.BlockSpec(shape, idx_map, pipeline_mode=pl.Buffered(1))
        return pl.BlockSpec(shape, idx_map)

    flops = 2 * B * (input_size * Hp + 2 * Hp * Hp + Hp * Cp)
    bytes_accessed = x_p.size * 2 + w_bytes + b_bytes + Bp * Cp * 4

    out_p = pl.pallas_call(
        mlp_kernel,
        out_shape=jax.ShapeDtypeStruct((Bp, Cp), jnp.float32),
        grid_spec=pltpu.PrefetchScalarGridSpec(
            num_scalar_prefetch=0,
            grid=(Bp // tB,),
            in_specs=[
                pl.BlockSpec((tB, In_p), lambda i: (i, 0)),   # streamed activations
                resident_spec((In_p, Hp)),                    # w1
                resident_spec((Hp, Hp)),                      # w2
                resident_spec((Hp, Hp)),                      # w3
                resident_spec((Hp, Cp)),                      # w4
                resident_spec((3, Hp)),                       # b1..b3
                resident_spec((1, Cp)),                       # b4
            ],
            out_specs=pl.BlockSpec((tB, Cp), lambda i: (i, 0)),
        ),
        compiler_params=pltpu.CompilerParams(
            dimension_semantics=("parallel",),
            vmem_limit_bytes=vmem_limit,
        ),
        cost_estimate=pl.CostEstimate(
            flops=flops, transcendentals=0, bytes_accessed=bytes_accessed),
    )(x_p, w1, w2, w3, w4, b123, b4)

    # Padding columns stay exactly zero through every layer; slice real rows/classes out.
    return out_p[:B, :num_classes]


def mlp_forward(x, packed, num_classes):
    """Fused-MLP forward. Prefers single-buffered resident weights; falls back to default
    pipeline buffering if this Pallas build rejects pipeline_mode=pl.Buffered(1)."""
    try:
        return _mlp_forward_impl(x, *packed, num_classes=num_classes,
                                 single_buffer_weights=True)
    except Exception:
        return _mlp_forward_impl(x, *packed, num_classes=num_classes,
                                 single_buffer_weights=False)


# ---------------------------------------------------------------------------
# Init + full-f32 reference (matches the PyTorch module semantics).
# ---------------------------------------------------------------------------
def init_params(key, input_size, hidden_size, num_classes):
    dims = [(input_size, hidden_size), (hidden_size, hidden_size),
            (hidden_size, hidden_size), (hidden_size, num_classes)]
    params = {}
    for i, (fan_in, fan_out) in enumerate(dims, start=1):
        key, kw, kb = jax.random.split(key, 3)
        bound = 1.0 / jnp.sqrt(fan_in)
        params[f"w{i}"] = jax.random.uniform(
            kw, (fan_in, fan_out), jnp.float32, -bound, bound)
        params[f"b{i}"] = jax.random.uniform(
            kb, (1, fan_out), jnp.float32, -bound, bound)
    return params


def mlp_reference(x, params):
    h = x
    for i in (1, 2, 3):
        h = h @ params[f"w{i}"] + params[f"b{i}"]
        h = jnp.where(h > 0, h, LEAKY_SLOPE * h)
    return h @ params["w4"] + params["b4"]


if __name__ == "__main__":
    key = jax.random.PRNGKey(0)
    batch, input_size, hidden_size, num_classes = 8, 32, 64, 16

    k_x, k_p = jax.random.split(key)
    x = jax.random.normal(k_x, (batch, input_size), jnp.float32)
    params = init_params(k_p, input_size, hidden_size, num_classes)

    # One-time packing (hoisted out of the per-call path), then jitted forward.
    packed, n_cls = pack_params(params)
    packed = jax.block_until_ready(packed)

    out = mlp_forward(x, packed, n_cls)
    out = jax.block_until_ready(out)

    ref = mlp_reference(x, params)
    assert out.shape == (batch, num_classes)
    # bf16 MXU operands -> loosened tolerance vs. the full-f32 reference.
    assert jnp.allclose(out, ref, atol=5e-2, rtol=5e-2), "mismatch vs reference"

    print("KERNEL_OK")
</pallas_src>

<mosaic_0001>
module attributes {stable_mosaic.version = 11 : i64} {
  func.func @mlp_kernel(%arg0: i32, %arg1: memref<16x128xbf16, #tpu.memory_space<vmem>>, %arg2: memref<128x128xbf16, #tpu.memory_space<vmem>>, %arg3: memref<128x128xbf16, #tpu.memory_space<vmem>>, %arg4: memref<128x128xbf16, #tpu.memory_space<vmem>>, %arg5: memref<128x128xbf16, #tpu.memory_space<vmem>>, %arg6: memref<3x128xf32, #tpu.memory_space<vmem>>, %arg7: memref<1x128xf32, #tpu.memory_space<vmem>>, %arg8: memref<16x128xf32, #tpu.memory_space<vmem>>) attributes {dimension_semantics = [#tpu.dimension_semantics<parallel>], iteration_bounds = array<i64: 1>, scalar_prefetch = 0 : i64, scratch_operands = 0 : i64, tpu.core_type = #tpu.core_type<tc>, window_params = [{transform_indices = @transform_0, window_bounds = array<i64: 16, 128>}, {pipeline_mode = #tpu.pipeline_mode<synchronous>, transform_indices = @transform_1, window_bounds = array<i64: 128, 128>}, {pipeline_mode = #tpu.pipeline_mode<synchronous>, transform_indices = @transform_2, window_bounds = array<i64: 128, 128>}, {pipeline_mode = #tpu.pipeline_mode<synchronous>, transform_indices = @transform_3, window_bounds = array<i64: 128, 128>}, {pipeline_mode = #tpu.pipeline_mode<synchronous>, transform_indices = @transform_4, window_bounds = array<i64: 128, 128>}, {pipeline_mode = #tpu.pipeline_mode<synchronous>, transform_indices = @transform_5, window_bounds = array<i64: 3, 128>}, {pipeline_mode = #tpu.pipeline_mode<synchronous>, transform_indices = @transform_6, window_bounds = array<i64: 1, 128>}, {transform_indices = @transform_7, window_bounds = array<i64: 16, 128>}]} {
    %c0 = arith.constant 0 : index
    %c0_0 = arith.constant 0 : index
    %0 = vector.load %arg6[%c0, %c0_0] : memref<3x128xf32, #tpu.memory_space<vmem>>, vector<3x128xf32>
    %c0_1 = arith.constant 0 : index
    %c0_2 = arith.constant 0 : index
    %1 = vector.load %arg1[%c0_1, %c0_2] : memref<16x128xbf16, #tpu.memory_space<vmem>>, vector<16x128xbf16>
    %c0_3 = arith.constant 0 : index
    %c0_4 = arith.constant 0 : index
    %2 = vector.load %arg2[%c0_3, %c0_4] : memref<128x128xbf16, #tpu.memory_space<vmem>>, vector<128x128xbf16>
    %cst = arith.constant dense<0.000000e+00> : vector<16x128xf32>
    %3 = tpu.matmul %1, %2, %cst {dimension_numbers = #tpu.dot_dimension_numbers<[1], [0], [0], [1], [0, 0, 1, 1], [], []>} : vector<16x128xbf16>, vector<128x128xbf16>, vector<16x128xf32> -> vector<16x128xf32>
    %4 = vector.extract_strided_slice %0 {offsets = [0, 0], sizes = [1, 128], strides = [1, 1]} : vector<3x128xf32> to vector<1x128xf32>
    %5 = vector.shape_cast %4 : vector<1x128xf32> to vector<128xf32>
    %6 = vector.shape_cast %5 : vector<128xf32> to vector<1x128xf32>
    %7 = vector.broadcast %6 : vector<1x128xf32> to vector<16x128xf32>
    %8 = arith.addf %3, %7 : vector<16x128xf32>
    %cst_5 = arith.constant 0.00999999977 : f32
    %9 = vector.broadcast %cst_5 : f32 to vector<16x128xf32>
    %10 = arith.mulf %9, %8 : vector<16x128xf32>
    %11 = arith.maximumf %8, %10 : vector<16x128xf32>
    %12 = arith.truncf %11 : vector<16x128xf32> to vector<16x128xbf16>
    %c0_6 = arith.constant 0 : index
    %c0_7 = arith.constant 0 : index
    %13 = vector.load %arg3[%c0_6, %c0_7] : memref<128x128xbf16, #tpu.memory_space<vmem>>, vector<128x128xbf16>
    %cst_8 = arith.constant dense<0.000000e+00> : vector<16x128xf32>
    %14 = tpu.matmul %12, %13, %cst_8 {dimension_numbers = #tpu.dot_dimension_numbers<[1], [0], [0], [1], [0, 0, 1, 1], [], []>} : vector<16x128xbf16>, vector<128x128xbf16>, vector<16x128xf32> -> vector<16x128xf32>
    %15 = vector.extract_strided_slice %0 {offsets = [1, 0], sizes = [1, 128], strides = [1, 1]} : vector<3x128xf32> to vector<1x128xf32>
    %16 = vector.shape_cast %15 : vector<1x128xf32> to vector<128xf32>
    %17 = vector.shape_cast %16 : vector<128xf32> to vector<1x128xf32>
    %18 = vector.broadcast %17 : vector<1x128xf32> to vector<16x128xf32>
    %19 = arith.addf %14, %18 : vector<16x128xf32>
    %cst_9 = arith.constant 0.00999999977 : f32
    %20 = vector.broadcast %cst_9 : f32 to vector<16x128xf32>
    %21 = arith.mulf %20, %19 : vector<16x128xf32>
    %22 = arith.maximumf %19, %21 : vector<16x128xf32>
    %23 = arith.truncf %22 : vector<16x128xf32> to vector<16x128xbf16>
    %c0_10 = arith.constant 0 : index
    %c0_11 = arith.constant 0 : index
    %24 = vector.load %arg4[%c0_10, %c0_11] : memref<128x128xbf16, #tpu.memory_space<vmem>>, vector<128x128xbf16>
    %cst_12 = arith.constant dense<0.000000e+00> : vector<16x128xf32>
    %25 = tpu.matmul %23, %24, %cst_12 {dimension_numbers = #tpu.dot_dimension_numbers<[1], [0], [0], [1], [0, 0, 1, 1], [], []>} : vector<16x128xbf16>, vector<128x128xbf16>, vector<16x128xf32> -> vector<16x128xf32>
    %26 = vector.extract_strided_slice %0 {offsets = [2, 0], sizes = [1, 128], strides = [1, 1]} : vector<3x128xf32> to vector<1x128xf32>
    %27 = vector.shape_cast %26 : vector<1x128xf32> to vector<128xf32>
    %28 = vector.shape_cast %27 : vector<128xf32> to vector<1x128xf32>
    %29 = vector.broadcast %28 : vector<1x128xf32> to vector<16x128xf32>
    %30 = arith.addf %25, %29 : vector<16x128xf32>
    %cst_13 = arith.constant 0.00999999977 : f32
    %31 = vector.broadcast %cst_13 : f32 to vector<16x128xf32>
    %32 = arith.mulf %31, %30 : vector<16x128xf32>
    %33 = arith.maximumf %30, %32 : vector<16x128xf32>
    %34 = arith.truncf %33 : vector<16x128xf32> to vector<16x128xbf16>
    %c0_14 = arith.constant 0 : index
    %c0_15 = arith.constant 0 : index
    %35 = vector.load %arg5[%c0_14, %c0_15] : memref<128x128xbf16, #tpu.memory_space<vmem>>, vector<128x128xbf16>
    %cst_16 = arith.constant dense<0.000000e+00> : vector<16x128xf32>
    %36 = tpu.matmul %34, %35, %cst_16 {dimension_numbers = #tpu.dot_dimension_numbers<[1], [0], [0], [1], [0, 0, 1, 1], [], []>} : vector<16x128xbf16>, vector<128x128xbf16>, vector<16x128xf32> -> vector<16x128xf32>
    %c0_17 = arith.constant 0 : index
    %c0_18 = arith.constant 0 : index
    %37 = vector.load %arg7[%c0_17, %c0_18] : memref<1x128xf32, #tpu.memory_space<vmem>>, vector<1x128xf32>
    %38 = vector.broadcast %37 : vector<1x128xf32> to vector<16x128xf32>
    %39 = arith.addf %36, %38 : vector<16x128xf32>
    %c0_19 = arith.constant 0 : index
    %c0_20 = arith.constant 0 : index
    %40 = vector.load %arg8[%c0_19, %c0_20] : memref<16x128xf32, #tpu.memory_space<vmem>>, vector<16x128xf32>
    tpu.vector_store %arg8[%c0_19, %c0_20], %39 {strides = array<i32>} : memref<16x128xf32, #tpu.memory_space<vmem>>, vector<16x128xf32>,
    return
  }
  func.func @transform_0(%arg0: i32) -> (i32, i32) {
    %c0_i32 = arith.constant 0 : i32
    %c0_i32_0 = arith.constant 0 : i32
    return %arg0, %c0_i32 : i32, i32
  }
  func.func @transform_1(%arg0: i32) -> (i32, i32) {
    %c0_i32 = arith.constant 0 : i32
    %c0_i32_0 = arith.constant 0 : i32
    %c0_i32_1 = arith.constant 0 : i32
    return %c0_i32, %c0_i32_0 : i32, i32
  }
  func.func @transform_2(%arg0: i32) -> (i32, i32) {
    %c0_i32 = arith.constant 0 : i32
    %c0_i32_0 = arith.constant 0 : i32
    %c0_i32_1 = arith.constant 0 : i32
    return %c0_i32, %c0_i32_0 : i32, i32
  }
  func.func @transform_3(%arg0: i32) -> (i32, i32) {
    %c0_i32 = arith.constant 0 : i32
    %c0_i32_0 = arith.constant 0 : i32
    %c0_i32_1 = arith.constant 0 : i32
    return %c0_i32, %c0_i32_0 : i32, i32
  }
  func.func @transform_4(%arg0: i32) -> (i32, i32) {
    %c0_i32 = arith.constant 0 : i32
    %c0_i32_0 = arith.constant 0 : i32
    %c0_i32_1 = arith.constant 0 : i32
    return %c0_i32, %c0_i32_0 : i32, i32
  }
  func.func @transform_5(%arg0: i32) -> (i32, i32) {
    %c0_i32 = arith.constant 0 : i32
    %c0_i32_0 = arith.constant 0 : i32
    %c0_i32_1 = arith.constant 0 : i32
    return %c0_i32, %c0_i32_0 : i32, i32
  }
  func.func @transform_6(%arg0: i32) -> (i32, i32) {
    %c0_i32 = arith.constant 0 : i32
    %c0_i32_0 = arith.constant 0 : i32
    %c0_i32_1 = arith.constant 0 : i32
    return %c0_i32, %c0_i32_0 : i32, i32
  }
  func.func @transform_7(%arg0: i32) -> (i32, i32) {
    %c0_i32 = arith.constant 0 : i32
    %c0_i32_0 = arith.constant 0 : i32
    return %arg0, %c0_i32 : i32, i32
  }
}

module attributes {stable_mosaic.version = 11 : i64} {
  func.func @mlp_kernel(%arg0: i32, %arg1: memref<16x128xbf16, #tpu.memory_space<vmem>>, %arg2: memref<128x128xbf16, #tpu.memory_space<vmem>>, %arg3: memref<128x128xbf16, #tpu.memory_space<vmem>>, %arg4: memref<128x128xbf16, #tpu.memory_space<vmem>>, %arg5: memref<128x128xbf16, #tpu.memory_space<vmem>>, %arg6: memref<3x128xf32, #tpu.memory_space<vmem>>, %arg7: memref<1x128xf32, #tpu.memory_space<vmem>>, %arg8: memref<16x128xf32, #tpu.memory_space<vmem>>) attributes {dimension_semantics = [#tpu.dimension_semantics<parallel>], iteration_bounds = array<i64: 1>, scalar_prefetch = 0 : i64, scratch_operands = 0 : i64, tpu.core_type = #tpu.core_type<tc>, window_params = [{transform_indices = @transform_0, window_bounds = array<i64: 16, 128>}, {pipeline_mode = #tpu.pipeline_mode<synchronous>, transform_indices = @transform_1, window_bounds = array<i64: 128, 128>}, {pipeline_mode = #tpu.pipeline_mode<synchronous>, transform_indices = @transform_2, window_bounds = array<i64: 128, 128>}, {pipeline_mode = #tpu.pipeline_mode<synchronous>, transform_indices = @transform_3, window_bounds = array<i64: 128, 128>}, {pipeline_mode = #tpu.pipeline_mode<synchronous>, transform_indices = @transform_4, window_bounds = array<i64: 128, 128>}, {pipeline_mode = #tpu.pipeline_mode<synchronous>, transform_indices = @transform_5, window_bounds = array<i64: 3, 128>}, {pipeline_mode = #tpu.pipeline_mode<synchronous>, transform_indices = @transform_6, window_bounds = array<i64: 1, 128>}, {transform_indices = @transform_7, window_bounds = array<i64: 16, 128>}]} {
    %c0 = arith.constant 0 : index
    %c0_0 = arith.constant 0 : index
    %0 = vector.load %arg6[%c0, %c0_0] : memref<3x128xf32, #tpu.memory_space<vmem>>, vector<3x128xf32>
    %c0_1 = arith.constant 0 : index
    %c0_2 = arith.constant 0 : index
    %1 = vector.load %arg1[%c0_1, %c0_2] : memref<16x128xbf16, #tpu.memory_space<vmem>>, vector<16x128xbf16>
    %c0_3 = arith.constant 0 : index
    %c0_4 = arith.constant 0 : index
    %2 = vector.load %arg2[%c0_3, %c0_4] : memref<128x128xbf16, #tpu.memory_space<vmem>>, vector<128x128xbf16>
    %cst = arith.constant dense<0.000000e+00> : vector<16x128xf32>
    %3 = tpu.matmul %1, %2, %cst {dimension_numbers = #tpu.dot_dimension_numbers<[1], [0], [0], [1], [0, 0, 1, 1], [], []>} : vector<16x128xbf16>, vector<128x128xbf16>, vector<16x128xf32> -> vector<16x128xf32>
    %4 = vector.extract_strided_slice %0 {offsets = [0, 0], sizes = [1, 128], strides = [1, 1]} : vector<3x128xf32> to vector<1x128xf32>
    %5 = vector.shape_cast %4 : vector<1x128xf32> to vector<128xf32>
    %6 = vector.shape_cast %5 : vector<128xf32> to vector<1x128xf32>
    %7 = vector.broadcast %6 : vector<1x128xf32> to vector<16x128xf32>
    %8 = arith.addf %3, %7 : vector<16x128xf32>
    %cst_5 = arith.constant 0.00999999977 : f32
    %9 = vector.broadcast %cst_5 : f32 to vector<16x128xf32>
    %10 = arith.mulf %9, %8 : vector<16x128xf32>
    %11 = arith.maximumf %8, %10 : vector<16x128xf32>
    %12 = arith.truncf %11 : vector<16x128xf32> to vector<16x128xbf16>
    %c0_6 = arith.constant 0 : index
    %c0_7 = arith.constant 0 : index
    %13 = vector.load %arg3[%c0_6, %c0_7] : memref<128x128xbf16, #tpu.memory_space<vmem>>, vector<128x128xbf16>
    %cst_8 = arith.constant dense<0.000000e+00> : vector<16x128xf32>
    %14 = tpu.matmul %12, %13, %cst_8 {dimension_numbers = #tpu.dot_dimension_numbers<[1], [0], [0], [1], [0, 0, 1, 1], [], []>} : vector<16x128xbf16>, vector<128x128xbf16>, vector<16x128xf32> -> vector<16x128xf32>
    %15 = vector.extract_strided_slice %0 {offsets = [1, 0], sizes = [1, 128], strides = [1, 1]} : vector<3x128xf32> to vector<1x128xf32>
    %16 = vector.shape_cast %15 : vector<1x128xf32> to vector<128xf32>
    %17 = vector.shape_cast %16 : vector<128xf32> to vector<1x128xf32>
    %18 = vector.broadcast %17 : vector<1x128xf32> to vector<16x128xf32>
    %19 = arith.addf %14, %18 : vector<16x128xf32>
    %cst_9 = arith.constant 0.00999999977 : f32
    %20 = vector.broadcast %cst_9 : f32 to vector<16x128xf32>
    %21 = arith.mulf %20, %19 : vector<16x128xf32>
    %22 = arith.maximumf %19, %21 : vector<16x128xf32>
    %23 = arith.truncf %22 : vector<16x128xf32> to vector<16x128xbf16>
    %c0_10 = arith.constant 0 : index
    %c0_11 = arith.constant 0 : index
    %24 = vector.load %arg4[%c0_10, %c0_11] : memref<128x128xbf16, #tpu.memory_space<vmem>>, vector<128x128xbf16>
    %cst_12 = arith.constant dense<0.000000e+00> : vector<16x128xf32>
    %25 = tpu.matmul %23, %24, %cst_12 {dimension_numbers = #tpu.dot_dimension_numbers<[1], [0], [0], [1], [0, 0, 1, 1], [], []>} : vector<16x128xbf16>, vector<128x128xbf16>, vector<16x128xf32> -> vector<16x128xf32>
    %26 = vector.extract_strided_slice %0 {offsets = [2, 0], sizes = [1, 128], strides = [1, 1]} : vector<3x128xf32> to vector<1x128xf32>
    %27 = vector.shape_cast %26 : vector<1x128xf32> to vector<128xf32>
    %28 = vector.shape_cast %27 : vector<128xf32> to vector<1x128xf32>
    %29 = vector.broadcast %28 : vector<1x128xf32> to vector<16x128xf32>
    %30 = arith.addf %25, %29 : vector<16x128xf32>
    %cst_13 = arith.constant 0.00999999977 : f32
    %31 = vector.broadcast %cst_13 : f32 to vector<16x128xf32>
    %32 = arith.mulf %31, %30 : vector<16x128xf32>
    %33 = arith.maximumf %30, %32 : vector<16x128xf32>
    %34 = arith.truncf %33 : vector<16x128xf32> to vector<16x128xbf16>
    %c0_14 = arith.constant 0 : index
    %c0_15 = arith.constant 0 : index
    %35 = vector.load %arg5[%c0_14, %c0_15] : memref<128x128xbf16, #tpu.memory_space<vmem>>, vector<128x128xbf16>
    %cst_16 = arith.constant dense<0.000000e+00> : vector<16x128xf32>
    %36 = tpu.matmul %34, %35, %cst_16 {dimension_numbers = #tpu.dot_dimension_numbers<[1], [0], [0], [1], [0, 0, 1, 1], [], []>} : vector<16x128xbf16>, vector<128x128xbf16>, vector<16x128xf32> -> vector<16x128xf32>
    %c0_17 = arith.constant 0 : index
    %c0_18 = arith.constant 0 : index
    %37 = vector.load %arg7[%c0_17, %c0_18] : memref<1x128xf32, #tpu.memory_space<vmem>>, vector<1x128xf32>
    %38 = vector.broadcast %37 : vector<1x128xf32> to vector<16x128xf32>
    %39 = arith.addf %36, %38 : vector<16x128xf32>
    %c0_19 = arith.constant 0 : index
    %c0_20 = arith.constant 0 : index
    %40 = vector.load %arg8[%c0_19, %c0_20] : memref<16x128xf32, #tpu.memory_space<vmem>>, vector<16x128xf32>
    tpu.vector_store %arg8[%c0_19, %c0_20], %39 {strides = array<i32>} : memref<16x128xf32, #tpu.memory_space<vmem>>, vector<16x128xf32>,
    return
  }
  func.func @transform_0(%arg0: i32) -> (i32, i32) {
    %c0_i32 = arith.constant 0 : i32
    %c0_i32_0 = arith.constant 0 : i32
    return %arg0, %c0_i32 : i32, i32
  }
  func.func @transform_1(%arg0: i32) -> (i32, i32) {
    %c0_i32 = arith.constant 0 : i32
    %c0_i32_0 = arith.constant 0 : i32
    %c0_i32_1 = arith.constant 0 : i32
    return %c0_i32, %c0_i32_0 : i32, i32
  }
  func.func @transform_2(%arg0: i32) -> (i32, i32) {
    %c0_i32 = arith.constant 0 : i32
    %c0_i32_0 = arith.constant 0 : i32
    %c0_i32_1 = arith.constant 0 : i32
    return %c0_i32, %c0_i32_0 : i32, i32
  }
  func.func @transform_3(%arg0: i32) -> (i32, i32) {
    %c0_i32 = arith.constant 0 : i32
    %c0_i32_0 = arith.constant 0 : i32
    %c0_i32_1 = arith.constant 0 : i32
    return %c0_i32, %c0_i32_0 : i32, i32
  }
  func.func @transform_4(%arg0: i32) -> (i32, i32) {
    %c0_i32 = arith.constant 0 : i32
    %c0_i32_0 = arith.constant 0 : i32
    %c0_i32_1 = arith.constant 0 : i32
    return %c0_i32, %c0_i32_0 : i32, i32
  }
  func.func @transform_5(%arg0: i32) -> (i32, i32) {
    %c0_i32 = arith.constant 0 : i32
    %c0_i32_0 = arith.constant 0 : i32
    %c0_i32_1 = arith.constant 0 : i32
    return %c0_i32, %c0_i32_0 : i32, i32
  }
  func.func @transform_6(%arg0: i32) -> (i32, i32) {
    %c0_i32 = arith.constant 0 : i32
    %c0_i32_0 = arith.constant 0 : i32
    %c0_i32_1 = arith.constant 0 : i32
    return %c0_i32, %c0_i32_0 : i32, i32
  }
  func.func @transform_7(%arg0: i32) -> (i32, i32) {
    %c0_i32 = arith.constant 0 : i32
    %c0_i32_0 = arith.constant 0 : i32
    return %arg0, %c0_i32 : i32, i32
  }
}

</mosaic_0001>

<bundles_post_ra>
// kernel: _mlp_forward_impl.1
= control target key start
LH: loop header
LB: loop body
LE: loop exit
PB: predicated region body
PF: predicated region fallthrough
CT: control target
= control target key end

     0   :  { %12 = vsyncpa [#allocation3], 0  ;;  %s788_s0 = inlined_call_operand.vmem [shape: bf16[16,128], index: 0, kind: input, shape index: {}]   ;;  %s789_s1 = inlined_call_operand.hbm [shape: bf16[128,128], index: 1, kind: input, shape index: {}]   ;;  %s790_s2 = inlined_call_operand.hbm [shape: bf16[128,128], index: 2, kind: input, shape index: {}]   ;;  %s791_s3 = inlined_call_operand.hbm [shape: bf16[128,128], index: 3, kind: input, shape index: {}]   ;;  %s792_s4 = inlined_call_operand.hbm [shape: bf16[128,128], index: 4, kind: input, shape index: {}]   ;;  %s793_s5 = inlined_call_operand.vmem [shape: f32[3,128], index: 5, kind: input, shape index: {}]   ;;  %s794_s6 = inlined_call_operand.vmem [shape: f32[1,128], index: 6, kind: input, shape index: {}]   ;;  %s795_s7 = inlined_call_operand.vmem [shape: f32[16,128], index: 7, kind: output, shape index: {}]  }
   0x1   :  { %13 = vsyncpa [#allocation5], 0 }
   0x2   :  { %14 = vsyncpa [#allocation8], 0  ;;  %s34_s26 = sshll.u32 %s790_s2, 4  ;;  %s715_s27 = smov [#allocation4]   ;;  %s35_s26 = int_to_ptr.hbm [resolvable:$true] %s34_s26 }
   0x3   :  { %s36_s28 = sshll.u32 %s715_s27, 4  ;;  %s21_s8 = sshll.u32 %s789_s1, 4  ;;  %s37_s28 = int_to_ptr.vmem [resolvable:$true] %s36_s28  ;;  %s22_s8 = int_to_ptr.hbm [resolvable:$true] %s21_s8 }
   0x4   :  { %s716_s9 = smov 64   ;;  %s717_s10 = smov 4  }
   0x5   :  { %42 = dma.hbm_to_vmem [thread:$0]  %s35_s26, 1024, %s37_s28, [#allocation5], %s716_s9, %s716_s9, %s717_s10  }
   0x6   :  { %s718_s11 = smov [#allocation2]   ;;  %s47_s15 = sshll.u32 %s791_s3, 4  ;;  %s48_s15 = int_to_ptr.hbm [resolvable:$true] %s47_s15 }
   0x7   :  { %s23_s12 = sshll.u32 %s718_s11, 4  ;;  %s60_s17 = sshll.u32 %s792_s4, 4  ;;  %s24_s12 = int_to_ptr.vmem [resolvable:$true] %s23_s12  ;;  %s61_s17 = int_to_ptr.hbm [resolvable:$true] %s60_s17 }
   0x8   :  { %29 = dma.hbm_to_vmem [thread:$0]  %s22_s8, 1024, %s24_s12, [#allocation3], %s716_s9, %s716_s9, %s717_s10  }
   0x9   :  { %s719_s18 = smov [#allocation6]   ;;  %s720_s1 = smov [#allocation7]  }
   0xa   :  { %s49_s19 = sshll.u32 %s719_s18, 4  ;;  %s62_s20 = sshll.u32 %s720_s1, 4  ;;  %s50_s19 = int_to_ptr.vmem [resolvable:$true] %s49_s19  ;;  %s63_s20 = int_to_ptr.vmem [resolvable:$true] %s62_s20 }
   0xb   :  { %55 = dma.hbm_to_vmem [thread:$0]  %s48_s15, 1024, %s50_s19, [#allocation5], %s716_s9, %s716_s9, %s717_s10  }
   0xc   :  { %68 = dma.hbm_to_vmem [thread:$0]  %s61_s17, 1024, %s63_s20, [#allocation8], %s716_s9, %s716_s9, %s717_s10  }
   0xd   :  { %709 = dma.done.wait [#allocation3], 1024  }
   0xe   :  { %710 = vsyncadd [#allocation3], 4294966272 }
   0xf   :  { %711 = dma.done.wait [#allocation5], 2048  }
  0x10   :  { %712 = vsyncadd [#allocation5], 4294965248 }
  0x11   :  { %713 = dma.done.wait [#allocation8], 1024  }
  0x12   :  { %714 = vsyncadd [#allocation8], 4294966272  ;;  %v581_v0 = vld [vmem:[#allocation2 + $0x38] sm:$0xff]  ;;  %v580_v1 = vld [vmem:[#allocation2 + $0x30] sm:$0xff] }
  0x13   :  { %163 = vmatpush.bf16.msra.mxu0 %v581_v0  ;;  %v589_v2 = vld [vmem:[#allocation4 + $0x38] sm:$0xff]  ;;  %v588_v3 = vld [vmem:[#allocation4 + $0x30] sm:$0xff]  ;;  %v579_v4 = vld [vmem:[#allocation2 + $0x28] sm:$0xff] }
  0x14   :  { %247 = vmatpush.bf16.msra.mxu1 %v589_v2  ;;  %v587_v5 = vld [vmem:[#allocation4 + $0x28] sm:$0xff]  ;;  %v578_v6 = vld [vmem:[#allocation2 + $0x20] sm:$0xff]  ;;  %v577_v8 = vld [vmem:[#allocation2 + $0x18] sm:$0xff] }
  0x15   :  { %v586_v7 = vld [vmem:[#allocation4 + $0x20] sm:$0xff]  ;;  %v576_v9 = vld [vmem:[#allocation2 + $0x10] sm:$0xff]  ;;  %v575_v10 = vld [vmem:[#allocation2 + $0x8] sm:$0xff] }
  0x16   :  { %v574_v11 = vld [vmem:[#allocation2] sm:$0xff]  ;;  %v585_v13 = vld [vmem:[#allocation4 + $0x18] sm:$0xff]  ;;  %v584_v14 = vld [vmem:[#allocation4 + $0x10] sm:$0xff] }
  0x17   :  { %164 = vmatpush.bf16.msra.mxu0 %v580_v1  ;;  %v573_v12 = vld [vmem:[%s788_s0] sm:$0xff]  ;;  %v583_v15 = vld [vmem:[#allocation4 + $0x8] sm:$0xff]  ;;  %v597_v17 = vld [vmem:[#allocation6 + $0x38] sm:$0xff] }
  0x18   :  { %248 = vmatpush.bf16.msra.mxu1 %v588_v3  ;;  %v582_v16 = vld [vmem:[#allocation4] sm:$0xff]  ;;  %331 = vmatpush.bf16.msra.mxu2 %v597_v17  ;;  %v596_v18 = vld [vmem:[#allocation6 + $0x30] sm:$0xff]  ;;  %v595_v19 = vld [vmem:[#allocation6 + $0x28] sm:$0xff] }
  0x19   :  { %v594_v20 = vld [vmem:[#allocation6 + $0x20] sm:$0xff]  ;;  %v593_v32 = vld [vmem:[#allocation6 + $0x18] sm:$0xff]  ;;  %v592_v33 = vld [vmem:[#allocation6 + $0x10] sm:$0xff] }
  0x1a   :  { %v89_v21 = vld [vmem:[%s793_s5] sm:$0x7]  ;;  %v591_v34 = vld [vmem:[#allocation6 + $0x8] sm:$0xff]  ;;  %v605_v36 = vld [vmem:[#allocation7 + $0x38] sm:$0xff] }
  0x1b   :  { %165 = vmatpush.bf16.msra.mxu0 %v579_v4  ;;  %v108_v23 = vperm.slane %v89_v21, 0  ;;  %v590_v35 = vld [vmem:[#allocation6] sm:$0xff]  ;;  %418 = vmatpush.bf16.msra.mxu3 %v605_v36  ;;  %v604_v37 = vld [vmem:[#allocation7 + $0x30] sm:$0xff]  ;;  %v603_v38 = vld [vmem:[#allocation7 + $0x28] sm:$0xff]  ;;  %v198_v41 = vperm.slane %v89_v21, 1  ;;  %v282_v55 = vperm.slane %v89_v21, 2 }
  0x1c   :  { %249 = vmatpush.bf16.msra.mxu1 %v587_v5  ;;  %332 = vmatpush.bf16.msra.mxu2 %v596_v18  ;;  %v602_v39 = vld [vmem:[#allocation7 + $0x20] sm:$0xff]  ;;  %v601_v50 = vld [vmem:[#allocation7 + $0x18] sm:$0xff]  ;;  %v600_v51 = vld [vmem:[#allocation7 + $0x10] sm:$0xff] }
  0x1d   :  { %v599_v52 = vld [vmem:[#allocation7 + $0x8] sm:$0xff]  ;;  %v598_v53 = vld [vmem:[#allocation7] sm:$0xff] }
  0x1e   :  { %v612_v0 = vld [vmem:[%s794_s6] ss:$0 sm:$0xff] }
  0x1f   :  { %166 = vmatpush.bf16.msra.mxu0 %v578_v6  ;;  %419 = vmatpush.bf16.msra.mxu3 %v604_v37 }
  0x20   :  { %250 = vmatpush.bf16.msra.mxu1 %v586_v7  ;;  %333 = vmatpush.bf16.msra.mxu2 %v595_v19 }
  0x23   :  { %167 = vmatpush.bf16.msra.mxu0 %v577_v8  ;;  %420 = vmatpush.bf16.msra.mxu3 %v603_v38 }
  0x24   :  { %251 = vmatpush.bf16.msra.mxu1 %v585_v13  ;;  %334 = vmatpush.bf16.msra.mxu2 %v594_v20 }
  0x27   :  { %168 = vmatpush.bf16.msra.mxu0 %v576_v9  ;;  %421 = vmatpush.bf16.msra.mxu3 %v602_v39 }
  0x28   :  { %252 = vmatpush.bf16.msra.mxu1 %v584_v14  ;;  %335 = vmatpush.bf16.msra.mxu2 %v593_v32 }
  0x2b   :  { %169 = vmatpush.bf16.msra.mxu0 %v575_v10  ;;  %422 = vmatpush.bf16.msra.mxu3 %v601_v50 }
  0x2c   :  { %253 = vmatpush.bf16.msra.mxu1 %v583_v15  ;;  %336 = vmatpush.bf16.msra.mxu2 %v592_v33 }
  0x2f   :  { %170 = vmatpush.bf16.msra.mxu0 %v574_v11  ;;  %423 = vmatpush.bf16.msra.mxu3 %v600_v51 }
  0x30   :  { %254 = vmatpush.bf16.msra.mxu1 %v582_v16  ;;  %337 = vmatpush.bf16.msra.mxu2 %v591_v34 }
  0x32   :  { %171 = vmatmul.bf16.vlgmr.msra.gmra.mxu0 %v573_v12 }
  0x33   :  { %424 = vmatpush.bf16.msra.mxu3 %v599_v52 }
  0x34   :  { %338 = vmatpush.bf16.msra.mxu2 %v590_v35 }
  0x37   :  { %425 = vmatpush.bf16.msra.mxu3 %v598_v53 }
  0xaf   :  { %v172_v22 = vpop.f32.mrf.mxu0 }
  0xb0   :  { %v173_v24 = vadd.f32 %v172_v22, %v108_v23 }
  0xb2   :  { %v177_v26 = vmul.f32 0.01, %v173_v24 }
  0xb4   :  { %v179_v29 = vmax.f32 %v173_v24, %v177_v26 }
  0xb7   :  { %v174_v25 = vpop.f32.mrf.mxu0 }
  0xb8   :  { %v175_v27 = vadd.f32 %v174_v25, %v108_v23 }
  0xba   :  { %v178_v28 = vmul.f32 0.01, %v175_v27 }
  0xbc   :  { %v180_v30 = vmax.f32 %v175_v27, %v178_v28 }
  0xbe   :  { %v181_v31 = vpack.c.bf16 %v180_v30, %v179_v29 }
  0xc0   :  { %255 = vmatmul.bf16.vlgmr.msra.gmra.mxu1 %v181_v31 }
 0x13d   :  { %v256_v40 = vpop.f32.mrf.mxu1 }
 0x13e   :  { %v257_v42 = vadd.f32 %v256_v40, %v198_v41 }
 0x140   :  { %v261_v44 = vmul.f32 0.01, %v257_v42 }
 0x142   :  { %v263_v47 = vmax.f32 %v257_v42, %v261_v44 }
 0x145   :  { %v258_v43 = vpop.f32.mrf.mxu1 }
 0x146   :  { %v259_v45 = vadd.f32 %v258_v43, %v198_v41 }
 0x148   :  { %v262_v46 = vmul.f32 0.01, %v259_v45 }
 0x14a   :  { %v264_v48 = vmax.f32 %v259_v45, %v262_v46 }
 0x14c   :  { %v265_v49 = vpack.c.bf16 %v264_v48, %v263_v47 }
 0x14e   :  { %339 = vmatmul.bf16.vlgmr.msra.gmra.mxu2 %v265_v49 }
 0x1d1   :  { %v340_v54 = vpop.f32.mrf.mxu2 }
 0x1d2   :  { %v341_v56 = vadd.f32 %v340_v54, %v282_v55 }
 0x1d4   :  { %v345_v58 = vmul.f32 0.01, %v341_v56 }
 0x1d6   :  { %v347_v61 = vmax.f32 %v341_v56, %v345_v58 }
 0x1d9   :  { %v342_v57 = vpop.f32.mrf.mxu2 }
 0x1da   :  { %v343_v59 = vadd.f32 %v342_v57, %v282_v55 }
 0x1dc   :  { %v346_v60 = vmul.f32 0.01, %v343_v59 }
 0x1de   :  { %v348_v62 = vmax.f32 %v343_v59, %v346_v60 }
 0x1e0   :  { %v349_v63 = vpack.c.bf16 %v348_v62, %v347_v61 }
 0x1e2   :  { %426 = vmatmul.bf16.vlgmr.msra.gmra.mxu3 %v349_v63 }
 0x265   :  { %v427_v1 = vpop.f32.mrf.mxu3 }
 0x266   :  { %v428_v2 = vadd.f32 %v612_v0, %v427_v1 }
 0x268   :  { %432 = vst [vmem:[%s795_s7] sm:$0xff] %v428_v2 }
 0x26d   :  { %v429_v3 = vpop.f32.mrf.mxu3 }
 0x26e   :  { %v430_v4 = vadd.f32 %v612_v0, %v429_v3 }
 0x270   :  { %433 = vst [vmem:[%s795_s7 + $0x8] sm:$0xff] %v430_v4 }
 0x271   :  { %438 = vsyncpa [#allocation3], 1 }
 0x272   :  { %439 = vsyncpa [#allocation5], 1 }
 0x273   :  { %440 = vsyncpa [#allocation8], 1 }

// kernel: _mlp_forward_impl.1
= control target key start
LH: loop header
LB: loop body
LE: loop exit
PB: predicated region body
PF: predicated region fallthrough
CT: control target
= control target key end

     0   :  { %12 = vsyncpa [#allocation3], 0  ;;  %s788_s0 = inlined_call_operand.vmem [shape: bf16[16,128], index: 0, kind: input, shape index: {}]   ;;  %s789_s1 = inlined_call_operand.hbm [shape: bf16[128,128], index: 1, kind: input, shape index: {}]   ;;  %s790_s2 = inlined_call_operand.hbm [shape: bf16[128,128], index: 2, kind: input, shape index: {}]   ;;  %s791_s3 = inlined_call_operand.hbm [shape: bf16[128,128], index: 3, kind: input, shape index: {}]   ;;  %s792_s4 = inlined_call_operand.hbm [shape: bf16[128,128], index: 4, kind: input, shape index: {}]   ;;  %s793_s5 = inlined_call_operand.vmem [shape: f32[3,128], index: 5, kind: input, shape index: {}]   ;;  %s794_s6 = inlined_call_operand.vmem [shape: f32[1,128], index: 6, kind: input, shape index: {}]   ;;  %s795_s7 = inlined_call_operand.vmem [shape: f32[16,128], index: 7, kind: output, shape index: {}]  }
   0x1   :  { %13 = vsyncpa [#allocation5], 0 }
   0x2   :  { %14 = vsyncpa [#allocation8], 0  ;;  %s34_s26 = sshll.u32 %s790_s2, 4  ;;  %s715_s27 = smov [#allocation4]   ;;  %s35_s26 = int_to_ptr.hbm [resolvable:$true] %s34_s26 }
   0x3   :  { %s36_s28 = sshll.u32 %s715_s27, 4  ;;  %s21_s8 = sshll.u32 %s789_s1, 4  ;;  %s37_s28 = int_to_ptr.vmem [resolvable:$true] %s36_s28  ;;  %s22_s8 = int_to_ptr.hbm [resolvable:$true] %s21_s8 }
   0x4   :  { %s716_s9 = smov 64   ;;  %s717_s10 = smov 4  }
   0x5   :  { %42 = dma.hbm_to_vmem [thread:$0]  %s35_s26, 1024, %s37_s28, [#allocation5], %s716_s9, %s716_s9, %s717_s10  }
   0x6   :  { %s718_s11 = smov [#allocation2]   ;;  %s47_s15 = sshll.u32 %s791_s3, 4  ;;  %s48_s15 = int_to_ptr.hbm [resolvable:$true] %s47_s15 }
   0x7   :  { %s23_s12 = sshll.u32 %s718_s11, 4  ;;  %s60_s17 = sshll.u32 %s792_s4, 4  ;;  %s24_s12 = int_to_ptr.vmem [resolvable:$true] %s23_s12  ;;  %s61_s17 = int_to_ptr.hbm [resolvable:$true] %s60_s17 }
   0x8   :  { %29 = dma.hbm_to_vmem [thread:$0]  %s22_s8, 1024, %s24_s12, [#allocation3], %s716_s9, %s716_s9, %s717_s10  }
   0x9   :  { %s719_s18 = smov [#allocation6]   ;;  %s720_s1 = smov [#allocation7]  }
   0xa   :  { %s49_s19 = sshll.u32 %s719_s18, 4  ;;  %s62_s20 = sshll.u32 %s720_s1, 4  ;;  %s50_s19 = int_to_ptr.vmem [resolvable:$true] %s49_s19  ;;  %s63_s20 = int_to_ptr.vmem [resolvable:$true] %s62_s20 }
   0xb   :  { %55 = dma.hbm_to_vmem [thread:$0]  %s48_s15, 1024, %s50_s19, [#allocation5], %s716_s9, %s716_s9, %s717_s10  }
   0xc   :  { %68 = dma.hbm_to_vmem [thread:$0]  %s61_s17, 1024, %s63_s20, [#allocation8], %s716_s9, %s716_s9, %s717_s10  }
   0xd   :  { %709 = dma.done.wait [#allocation3], 1024  }
   0xe   :  { %710 = vsyncadd [#allocation3], 4294966272 }
   0xf   :  { %711 = dma.done.wait [#allocation5], 2048  }
  0x10   :  { %712 = vsyncadd [#allocation5], 4294965248 }
  0x11   :  { %713 = dma.done.wait [#allocation8], 1024  }
  0x12   :  { %714 = vsyncadd [#allocation8], 4294966272  ;;  %v581_v0 = vld [vmem:[#allocation2 + $0x38] sm:$0xff]  ;;  %v580_v1 = vld [vmem:[#allocation2 + $0x30] sm:$0xff] }
  0x13   :  { %163 = vmatpush.bf16.msra.mxu0 %v581_v0  ;;  %v589_v2 = vld [vmem:[#allocation4 + $0x38] sm:$0xff]  ;;  %v588_v3 = vld [vmem:[#allocation4 + $0x30] sm:$0xff]  ;;  %v579_v4 = vld [vmem:[#allocation2 + $0x28] sm:$0xff] }
  0x14   :  { %247 = vmatpush.bf16.msra.mxu1 %v589_v2  ;;  %v587_v5 = vld [vmem:[#allocation4 + $0x28] sm:$0xff]  ;;  %v578_v6 = vld [vmem:[#allocation2 + $0x20] sm:$0xff]  ;;  %v577_v8 = vld [vmem:[#allocation2 + $0x18] sm:$0xff] }
  0x15   :  { %v586_v7 = vld [vmem:[#allocation4 + $0x20] sm:$0xff]  ;;  %v576_v9 = vld [vmem:[#allocation2 + $0x10] sm:$0xff]  ;;  %v575_v10 = vld [vmem:[#allocation2 + $0x8] sm:$0xff] }
  0x16   :  { %v574_v11 = vld [vmem:[#allocation2] sm:$0xff]  ;;  %v585_v13 = vld [vmem:[#allocation4 + $0x18] sm:$0xff]  ;;  %v584_v14 = vld [vmem:[#allocation4 + $0x10] sm:$0xff] }
  0x17   :  { %164 = vmatpush.bf16.msra.mxu0 %v580_v1  ;;  %v573_v12 = vld [vmem:[%s788_s0] sm:$0xff]  ;;  %v583_v15 = vld [vmem:[#allocation4 + $0x8] sm:$0xff]  ;;  %v597_v17 = vld [vmem:[#allocation6 + $0x38] sm:$0xff] }
  0x18   :  { %248 = vmatpush.bf16.msra.mxu1 %v588_v3  ;;  %v582_v16 = vld [vmem:[#allocation4] sm:$0xff]  ;;  %331 = vmatpush.bf16.msra.mxu2 %v597_v17  ;;  %v596_v18 = vld [vmem:[#allocation6 + $0x30] sm:$0xff]  ;;  %v595_v19 = vld [vmem:[#allocation6 + $0x28] sm:$0xff] }
  0x19   :  { %v594_v20 = vld [vmem:[#allocation6 + $0x20] sm:$0xff]  ;;  %v593_v32 = vld [vmem:[#allocation6 + $0x18] sm:$0xff]  ;;  %v592_v33 = vld [vmem:[#allocation6 + $0x10] sm:$0xff] }
  0x1a   :  { %v89_v21 = vld [vmem:[%s793_s5] sm:$0x7]  ;;  %v591_v34 = vld [vmem:[#allocation6 + $0x8] sm:$0xff]  ;;  %v605_v36 = vld [vmem:[#allocation7 + $0x38] sm:$0xff] }
  0x1b   :  { %165 = vmatpush.bf16.msra.mxu0 %v579_v4  ;;  %v108_v23 = vperm.slane %v89_v21, 0  ;;  %v590_v35 = vld [vmem:[#allocation6] sm:$0xff]  ;;  %418 = vmatpush.bf16.msra.mxu3 %v605_v36  ;;  %v604_v37 = vld [vmem:[#allocation7 + $0x30] sm:$0xff]  ;;  %v603_v38 = vld [vmem:[#allocation7 + $0x28] sm:$0xff]  ;;  %v198_v41 = vperm.slane %v89_v21, 1  ;;  %v282_v55 = vperm.slane %v89_v21, 2 }
  0x1c   :  { %249 = vmatpush.bf16.msra.mxu1 %v587_v5  ;;  %332 = vmatpush.bf16.msra.mxu2 %v596_v18  ;;  %v602_v39 = vld [vmem:[#allocation7 + $0x20] sm:$0xff]  ;;  %v601_v50 = vld [vmem:[#allocation7 + $0x18] sm:$0xff]  ;;  %v600_v51 = vld [vmem:[#allocation7 + $0x10] sm:$0xff] }
  0x1d   :  { %v599_v52 = vld [vmem:[#allocation7 + $0x8] sm:$0xff]  ;;  %v598_v53 = vld [vmem:[#allocation7] sm:$0xff] }
  0x1e   :  { %v612_v0 = vld [vmem:[%s794_s6] ss:$0 sm:$0xff] }
  0x1f   :  { %166 = vmatpush.bf16.msra.mxu0 %v578_v6  ;;  %419 = vmatpush.bf16.msra.mxu3 %v604_v37 }
  0x20   :  { %250 = vmatpush.bf16.msra.mxu1 %v586_v7  ;;  %333 = vmatpush.bf16.msra.mxu2 %v595_v19 }
  0x23   :  { %167 = vmatpush.bf16.msra.mxu0 %v577_v8  ;;  %420 = vmatpush.bf16.msra.mxu3 %v603_v38 }
  0x24   :  { %251 = vmatpush.bf16.msra.mxu1 %v585_v13  ;;  %334 = vmatpush.bf16.msra.mxu2 %v594_v20 }
  0x27   :  { %168 = vmatpush.bf16.msra.mxu0 %v576_v9  ;;  %421 = vmatpush.bf16.msra.mxu3 %v602_v39 }
  0x28   :  { %252 = vmatpush.bf16.msra.mxu1 %v584_v14  ;;  %335 = vmatpush.bf16.msra.mxu2 %v593_v32 }
  0x2b   :  { %169 = vmatpush.bf16.msra.mxu0 %v575_v10  ;;  %422 = vmatpush.bf16.msra.mxu3 %v601_v50 }
  0x2c   :  { %253 = vmatpush.bf16.msra.mxu1 %v583_v15  ;;  %336 = vmatpush.bf16.msra.mxu2 %v592_v33 }
  0x2f   :  { %170 = vmatpush.bf16.msra.mxu0 %v574_v11  ;;  %423 = vmatpush.bf16.msra.mxu3 %v600_v51 }
  0x30   :  { %254 = vmatpush.bf16.msra.mxu1 %v582_v16  ;;  %337 = vmatpush.bf16.msra.mxu2 %v591_v34 }
  0x32   :  { %171 = vmatmul.bf16.vlgmr.msra.gmra.mxu0 %v573_v12 }
  0x33   :  { %424 = vmatpush.bf16.msra.mxu3 %v599_v52 }
  0x34   :  { %338 = vmatpush.bf16.msra.mxu2 %v590_v35 }
  0x37   :  { %425 = vmatpush.bf16.msra.mxu3 %v598_v53 }
  0xaf   :  { %v172_v22 = vpop.f32.mrf.mxu0 }
  0xb0   :  { %v173_v24 = vadd.f32 %v172_v22, %v108_v23 }
  0xb2   :  { %v177_v26 = vmul.f32 0.01, %v173_v24 }
  0xb4   :  { %v179_v29 = vmax.f32 %v173_v24, %v177_v26 }
  0xb7   :  { %v174_v25 = vpop.f32.mrf.mxu0 }
  0xb8   :  { %v175_v27 = vadd.f32 %v174_v25, %v108_v23 }
  0xba   :  { %v178_v28 = vmul.f32 0.01, %v175_v27 }
  0xbc   :  { %v180_v30 = vmax.f32 %v175_v27, %v178_v28 }
  0xbe   :  { %v181_v31 = vpack.c.bf16 %v180_v30, %v179_v29 }
  0xc0   :  { %255 = vmatmul.bf16.vlgmr.msra.gmra.mxu1 %v181_v31 }
 0x13d   :  { %v256_v40 = vpop.f32.mrf.mxu1 }
 0x13e   :  { %v257_v42 = vadd.f32 %v256_v40, %v198_v41 }
 0x140   :  { %v261_v44 = vmul.f32 0.01, %v257_v42 }
 0x142   :  { %v263_v47 = vmax.f32 %v257_v42, %v261_v44 }
 0x145   :  { %v258_v43 = vpop.f32.mrf.mxu1 }
 0x146   :  { %v259_v45 = vadd.f32 %v258_v43, %v198_v41 }
 0x148   :  { %v262_v46 = vmul.f32 0.01, %v259_v45 }
 0x14a   :  { %v264_v48 = vmax.f32 %v259_v45, %v262_v46 }
 0x14c   :  { %v265_v49 = vpack.c.bf16 %v264_v48, %v263_v47 }
 0x14e   :  { %339 = vmatmul.bf16.vlgmr.msra.gmra.mxu2 %v265_v49 }
 0x1d1   :  { %v340_v54 = vpop.f32.mrf.mxu2 }
 0x1d2   :  { %v341_v56 = vadd.f32 %v340_v54, %v282_v55 }
 0x1d4   :  { %v345_v58 = vmul.f32 0.01, %v341_v56 }
 0x1d6   :  { %v347_v61 = vmax.f32 %v341_v56, %v345_v58 }
 0x1d9   :  { %v342_v57 = vpop.f32.mrf.mxu2 }
 0x1da   :  { %v343_v59 = vadd.f32 %v342_v57, %v282_v55 }
 0x1dc   :  { %v346_v60 = vmul.f32 0.01, %v343_v59 }
 0x1de   :  { %v348_v62 = vmax.f32 %v343_v59, %v346_v60 }
 0x1e0   :  { %v349_v63 = vpack.c.bf16 %v348_v62, %v347_v61 }
 0x1e2   :  { %426 = vmatmul.bf16.vlgmr.msra.gmra.mxu3 %v349_v63 }
 0x265   :  { %v427_v1 = vpop.f32.mrf.mxu3 }
 0x266   :  { %v428_v2 = vadd.f32 %v612_v0, %v427_v1 }
 0x268   :  { %432 = vst [vmem:[%s795_s7] sm:$0xff] %v428_v2 }
 0x26d   :  { %v429_v3 = vpop.f32.mrf.mxu3 }
 0x26e   :  { %v430_v4 = vadd.f32 %v612_v0, %v429_v3 }
 0x270   :  { %433 = vst [vmem:[%s795_s7 + $0x8] sm:$0xff] %v430_v4 }
 0x271   :  { %438 = vsyncpa [#allocation3], 1 }
 0x272   :  { %439 = vsyncpa [#allocation5], 1 }
 0x273   :  { %440 = vsyncpa [#allocation8], 1 }

</bundles_post_ra>
